<compile_context>
chip_gen: v5e
topology: v5e:2x2
jax: 0.10.0
libtpu: 0.0.40
codegen_flags: <defaults>
</compile_context>

<pallas_src>
import jax
import jax.numpy as jnp
from jax.experimental import pallas as pl
from jax.experimental.pallas import tpu as pltpu

_LANES = 128


def _bernoulli_logprob_kernel(logits_ref, target_ref, out_ref):
    # Elementwise hot path: stable -BCEWithLogits. max/abs/mul on the VPU,
    # exp/log1p on the EUP; all hidden behind the HBM stream.
    x = logits_ref[...].astype(jnp.float32)
    z = target_ref[...].astype(jnp.float32)
    loss = jnp.maximum(x, 0.0) - x * z + jnp.log1p(jnp.exp(-jnp.abs(x)))
    out_ref[...] = (-loss).astype(out_ref.dtype)


def _bernoulli_logprob_jnp(logits, target):
    x = logits.astype(jnp.float32)
    z = target.astype(jnp.float32)
    loss = jnp.maximum(x, 0.0) - x * z + jnp.log1p(jnp.exp(-jnp.abs(x)))
    return (-loss).astype(logits.dtype)


def _round_up(x, m):
    return ((x + m - 1) // m) * m


def bernoulli_log_prob(logits, target, *, block_rows=2048, min_pallas_elems=1 << 15):
    """-BCEWithLogitsLoss(reduction='none')(logits, target), elementwise."""
    assert logits.shape == target.shape, "logits/target must have the same shape"
    orig_shape = logits.shape
    out_dtype = logits.dtype
    n = int(logits.size)

    # Small-input bypass: a single-tile pallas_call is pure launch/DMA overhead.
    if n == 0 or n <= min_pallas_elems:
        return _bernoulli_logprob_jnp(logits, target)

    # Lane-dense 2-D slab: pad only up to the next multiple of 128 (needed for
    # the reshape). No padding at all when n is already 128-aligned.
    rows = -(-n // _LANES)
    pad = rows * _LANES - n

    def to_slab(a):
        flat = a.reshape(-1)
        if pad:
            flat = jnp.pad(flat, (0, pad))
        return flat.reshape(rows, _LANES)

    logits2d = to_slab(logits)
    target2d = to_slab(target)

    # Block size: target ~1 MiB/array/buffer (2048 rows of f32), but cap it so
    # the grid keeps >=4 steps (both v7x TensorCores stream; pipeline overlaps).
    # The last block may be partial; Pallas masks it.
    br = min(block_rows, max(8, _round_up(-(-rows // 4), 8)))
    grid = (-(-rows // br),)

    bytes_per_elem = (jnp.dtype(logits.dtype).itemsize
                      + jnp.dtype(target.dtype).itemsize
                      + jnp.dtype(out_dtype).itemsize)
    cost = pl.CostEstimate(flops=5 * n,
                           transcendentals=2 * n,
                           bytes_accessed=n * bytes_per_elem)

    out2d = pl.pallas_call(
        _bernoulli_logprob_kernel,
        out_shape=jax.ShapeDtypeStruct((rows, _LANES), out_dtype),
        grid_spec=pltpu.PrefetchScalarGridSpec(
            num_scalar_prefetch=0,
            grid=grid,
            in_specs=[
                pl.BlockSpec((br, _LANES), lambda i: (i, 0)),
                pl.BlockSpec((br, _LANES), lambda i: (i, 0)),
            ],
            out_specs=pl.BlockSpec((br, _LANES), lambda i: (i, 0)),
        ),
        compiler_params=pltpu.CompilerParams(
            dimension_semantics=("parallel",),
        ),
        cost_estimate=cost,
    )(logits2d, target2d)

    if pad:
        return out2d.reshape(-1)[:n].reshape(orig_shape)
    return out2d.reshape(orig_shape)


def _reference(logits, target):
    return _bernoulli_logprob_jnp(logits, target)


if __name__ == "__main__":
    key = jax.random.PRNGKey(0)
    k1, k2, k3, k4, k5, k6 = jax.random.split(key, 6)

    # NCHW-style small example input, as the module would see from a decoder.
    shape = (2, 4, 16, 16)
    logits = jax.random.normal(k1, shape, dtype=jnp.float32) * 3.0
    target = (jax.random.uniform(k2, shape) > 0.5).astype(jnp.float32)

    # Force the Pallas path at the spec shape (small-input bypass would
    # otherwise handle it with plain jnp).
    out = jax.block_until_ready(bernoulli_log_prob(logits, target, min_pallas_elems=0))
    ref = _reference(logits, target)
    assert out.shape == shape
    assert jnp.allclose(out, ref, atol=1e-5, rtol=1e-5), "mismatch (pallas, spec shape)"

    # Default path for the same input (small-input bypass).
    out_fast = jax.block_until_ready(bernoulli_log_prob(logits, target))
    assert jnp.allclose(out_fast, ref, atol=1e-5, rtol=1e-5), "mismatch (bypass path)"

    # Larger input: multi-step parallel grid through the Pallas path.
    big_shape = (8, 4, 96, 96)
    big_logits = jax.random.normal(k3, big_shape, dtype=jnp.float32) * 3.0
    big_target = (jax.random.uniform(k4, big_shape) > 0.5).astype(jnp.float32)
    big_out = jax.block_until_ready(bernoulli_log_prob(big_logits, big_target))
    assert jnp.allclose(big_out, _reference(big_logits, big_target),
                        atol=1e-5, rtol=1e-5), "mismatch (pallas, large)"

    # Ragged input: n not a multiple of 128 -> pad path + partial final block.
    odd_shape = (3, 5, 7, 11)
    odd_logits = jax.random.normal(k5, odd_shape, dtype=jnp.float32) * 3.0
    odd_target = (jax.random.uniform(k6, odd_shape) > 0.5).astype(jnp.float32)
    odd_out = jax.block_until_ready(
        bernoulli_log_prob(odd_logits, odd_target, min_pallas_elems=0))
    assert odd_out.shape == odd_shape
    assert jnp.allclose(odd_out, _reference(odd_logits, odd_target),
                        atol=1e-5, rtol=1e-5), "mismatch (pallas, ragged)"

    print("KERNEL_OK")
</pallas_src>

<mosaic_0001>
module attributes {stable_mosaic.version = 11 : i64} {
  func.func @_bernoulli_logprob_kernel(%arg0: i32, %arg1: memref<8x128xf32, #tpu.memory_space<vmem>>, %arg2: memref<8x128xf32, #tpu.memory_space<vmem>>, %arg3: memref<8x128xf32, #tpu.memory_space<vmem>>) attributes {dimension_semantics = [#tpu.dimension_semantics<parallel>], iteration_bounds = array<i64: 2>, scalar_prefetch = 0 : i64, scratch_operands = 0 : i64, tpu.core_type = #tpu.core_type<tc>, window_params = [{transform_indices = @transform_0, window_bounds = array<i64: 8, 128>}, {transform_indices = @transform_1, window_bounds = array<i64: 8, 128>}, {transform_indices = @transform_2, window_bounds = array<i64: 8, 128>}]} {
    %c0 = arith.constant 0 : index
    %c0_0 = arith.constant 0 : index
    %0 = vector.load %arg1[%c0, %c0_0] : memref<8x128xf32, #tpu.memory_space<vmem>>, vector<8x128xf32>
    %c0_1 = arith.constant 0 : index
    %c0_2 = arith.constant 0 : index
    %1 = vector.load %arg2[%c0_1, %c0_2] : memref<8x128xf32, #tpu.memory_space<vmem>>, vector<8x128xf32>
    %cst = arith.constant 0.000000e+00 : f32
    %2 = vector.broadcast %cst : f32 to vector<8x128xf32>
    %3 = arith.maximumf %0, %2 : vector<8x128xf32>
    %4 = arith.mulf %0, %1 : vector<8x128xf32>
    %5 = arith.subf %3, %4 : vector<8x128xf32>
    %6 = math.absf %0 : vector<8x128xf32>
    %cst_3 = arith.constant 0.000000e+00 : f32
    %7 = vector.broadcast %cst_3 : f32 to vector<8x128xf32>
    %8 = arith.subf %7, %6 : vector<8x128xf32>
    %9 = math.exp %8 : vector<8x128xf32>
    %10 = math.log1p %9 : vector<8x128xf32>
    %11 = arith.addf %5, %10 : vector<8x128xf32>
    %cst_4 = arith.constant 0.000000e+00 : f32
    %12 = vector.broadcast %cst_4 : f32 to vector<8x128xf32>
    %13 = arith.subf %12, %11 : vector<8x128xf32>
    %c0_5 = arith.constant 0 : index
    %c0_6 = arith.constant 0 : index
    %14 = vector.load %arg3[%c0_5, %c0_6] : memref<8x128xf32, #tpu.memory_space<vmem>>, vector<8x128xf32>
    tpu.vector_store %arg3[%c0_5, %c0_6], %13 {strides = array<i32>} : memref<8x128xf32, #tpu.memory_space<vmem>>, vector<8x128xf32>,
    return
  }
  func.func @transform_0(%arg0: i32) -> (i32, i32) {
    %c0_i32 = arith.constant 0 : i32
    %c0_i32_0 = arith.constant 0 : i32
    return %arg0, %c0_i32 : i32, i32
  }
  func.func @transform_1(%arg0: i32) -> (i32, i32) {
    %c0_i32 = arith.constant 0 : i32
    %c0_i32_0 = arith.constant 0 : i32
    return %arg0, %c0_i32 : i32, i32
  }
  func.func @transform_2(%arg0: i32) -> (i32, i32) {
    %c0_i32 = arith.constant 0 : i32
    %c0_i32_0 = arith.constant 0 : i32
    return %arg0, %c0_i32 : i32, i32
  }
}

</mosaic_0001>

<bundles_post_ra>
// kernel: tpu_custom_call.1
= control target key start
LH: loop header
LB: loop body
LE: loop exit
PB: predicated region body
PF: predicated region fallthrough
CT: control target
= control target key end

     0   :  { %7 = vsyncpa [#allocation3], 0  ;;  %s712_s0 = inlined_call_operand.hbm [shape: f32[16,128], index: 0, kind: input, shape index: {}]   ;;  %s713_s1 = inlined_call_operand.hbm [shape: f32[16,128], index: 1, kind: input, shape index: {}]   ;;  %s714_s2 = inlined_call_operand.hbm [shape: f32[16,128], index: 2, kind: output, shape index: {}]  }
   0x1   :  { %9 = vsyncpa [#allocation3 + $0x1], 0 }
   0x2   :  { %10 = vsyncpa [#allocation6], 0 }
   0x3   :  { %12 = vsyncpa [#allocation6 + $0x1], 0 }
   0x4   :  { %13 = vsyncpa [#allocation4], 0 }
   0x5   :  { %15 = vsyncpa [#allocation4 + $0x1], 0  ;;  %s547_s9 = smov 0   ;;  %s549_s10 = smov 0  }
   0x6   :  { %s551_s11 = smov 0   ;;  %s553_s12 = smov 0  }
   0x7 LB: > { %s568_s13 = sadd.s32 4294967295, %s530_s12   ;;  %s330_s14 = sadd.s32 4294967294, %s530_s12   ;;  %s530_s12 = sphi %s553_s12, %s725_s12   ;;  %s526_s11 = sphi %s551_s11, %s724_s11   ;;  %s522_s10 = sphi %s549_s10, %s723_s10   ;;  %s518_s9 = sphi %s547_s9, %s722_s9  }
   0x8   : > { %s572_s15 = sadd.s32 1, %s530_s12   ;;  %s28_s16 = sadd.s32 1, %s526_s11 }
   0x9   : > { %s25_s17 = ssub.s32 %s530_s12, %s572_s15  ;;  %p35_p0 = scmp.ne.s32.totalorder %s526_s11, %s522_s10 }
   0xa   : > { %p26_p1 = scmp.eq.s32.totalorder %s25_s17, 0  ;;  %p36_p2 = scmp.eq.s32.totalorder %s530_s12, 0 }
   0xb   : > { %p41_p3 = scmp.ne.s32.totalorder %s522_s10, %s518_s9  ;;  %p42_p4 = scmp.eq.s32.totalorder %s568_s13, 0 }
   0xc   : > { %s584_s18 = scalar_select %p26_p1, %s526_s11, %s28_s16  }
   0xd   : > { %p586_p5 = por %p36_p2, %p35_p0  ;;  %p590_p6 = por %p42_p4, %p41_p3 }
   0xe   : > { %p91_p7 = scmp.eq.s32.totalorder %s568_s13, 1  ;;  %p97_p8 = scmp.eq.s32.totalorder %s330_s14, 1 }
   0xf   : > { %p362_p10 = scmp.lt.s32.totalorder %s530_s12, 2  ;;  %s606_s23 = sand.u32 1, %s526_s11  }
  0x10   : > { %p597_p11 = por %p91_p7, %p35_p0  ;;  %p601_p12 = por %p97_p8, %p41_p3 }
  0x11   : > { %s334_s24 = sshll.u32 %s530_s12, 3  ;;  %s333_s25 = sshll.u32 %s606_s23, 3 }
  0x12   : > { %s125_s28 = scalar_lea.hbm %s712_s0, %s334_s24  ;;  %s121_s30 = scalar_lea.vmem [#allocation2], %s333_s25 }
  0x13   : > { %s127_s29 = sshll.u32 %s125_s28, 4  ;;  %s129_s3 = sshll.u32 %s121_s30, 4  ;;  %s128_s29 = int_to_ptr.hbm [resolvable:$true] %s127_s29  ;;  %s130_s3 = int_to_ptr.vmem [resolvable:$true] %s129_s3 }
  0x14   : > { %p615_p13 = pnand %p362_p10, %p586_p5  ;;  %p337_p0 = scmp.ge.s32.totalorder %s530_s12, 1 }
  0x15   : > { %p153_p1 = scmp.lt.s32.totalorder %s530_s12, 3  ;;  %s118_s5 = scalar_lea.sflag [#allocation3], %s606_s23 }
  0x16   : > { %s400_s6 = sshra.s32 %s128_s29, 4  ;;  %p404_p3 = pneg %p615_p13  ;;  %s401_s6 = int_to_ptr.hbm [resolvable:$true] %s400_s6 }
  0x17   : > { %s402_s7 = scalar_lea.hbm %s401_s6, 8  ;;  %s407_s16 = scalar_lea.hbm %s712_s0, 16 }
  0x18   : > { %p403_p2 = scmp.ne.s32.totalorder %s401_s6, %s402_s7  ;;  %p408_p5 = scmp.lt.s32.totalorder %s401_s6, %s712_s0 }
  0x19   : > { %p409_p8 = scmp.lt.s32.totalorder %s407_s16, %s402_s7 }
  0x1a   : > { %p405_p4 = pnand %p404_p3, %p403_p2 }
  0x1b   : > { %p410_p10 = por %p409_p8, %p408_p5 }
  0x1c   : > { %p406_p7 = pneg %p405_p4 }
  0x1e   : > { %p411_p9 = pnand %p410_p10, %p406_p7 }
  0x20   : > { %414 = shalt.err (!%p411_p9)
}
  0x21   : > { %354 = dma.hbm_to_vmem [thread:$0]  (!%p615_p13), %s128_s29, 128, %s130_s3, %s118_s5  }
  0x22   : > { %p639_p2 = pnand %p337_p0, %p153_p1  ;;  %s144_s30 = scalar_lea.hbm %s713_s1, %s334_s24 }
  0x23   : > { %s146_s6 = sshll.u32 %s144_s30, 4  ;;  %s140_s7 = scalar_lea.vmem [#allocation5], %s333_s25  ;;  %s147_s6 = int_to_ptr.hbm [resolvable:$true] %s146_s6 }
  0x24   : > { %s148_s8 = sshll.u32 %s140_s7, 4  ;;  %s137_s14 = scalar_lea.sflag [#allocation6], %s606_s23  ;;  %s149_s8 = int_to_ptr.vmem [resolvable:$true] %s148_s8 }
  0x25   : > { %s430_s16 = sshra.s32 %s147_s6, 4  ;;  %s437_s5 = scalar_lea.hbm %s713_s1, 16  ;;  %s431_s16 = int_to_ptr.hbm [resolvable:$true] %s430_s16 }
  0x26   : > { %s432_s17 = scalar_lea.hbm %s431_s16, 8  ;;  %p438_p4 = scmp.lt.s32.totalorder %s431_s16, %s713_s1 }
  0x27   : > { %p433_p9 = scmp.ne.s32.totalorder %s431_s16, %s432_s17  ;;  %p439_p7 = scmp.lt.s32.totalorder %s437_s5, %s432_s17 }
  0x29   : > { %p435_p0 = pnand %p433_p9, %p404_p3  ;;  %p440_p5 = por %p439_p7, %p438_p4 }
  0x2b   : > { %p436_p1 = pneg %p435_p0 }
  0x2d   : > { %p441_p8 = pnand %p440_p5, %p436_p1 }
  0x2f   : > { %444 = shalt.err (!%p441_p8)
}
  0x30   : > { %357 = dma.hbm_to_vmem [thread:$0]  (!%p615_p13), %s147_s6, 128, %s149_s8, %s137_s14  }
  0x31   : > { %157 = sbr.rel (%p639_p2) target bundleno = 90 (0x5a), region = 28  ;;  %s661_s23 = sand.u32 (!%p639_p2), 1, %s522_s10  }
  0x32   : > { %s664_s25 = sshll.u32 (!%p639_p2), %s661_s23, 3  ;;  %s160_s27 = scalar_lea.sflag (!%p639_p2), [#allocation3], %s661_s23 }
  0x33   : > { %s163_s28 = scalar_lea.vmem (!%p639_p2), [#allocation2], %s664_s25 }
  0x36   : > { %505 = dma.done.wait (%p590_p6), %s160_s27, 128  }
  0x37   : > { %507 = vsyncadd (%p590_p6), %s160_s27, 4294967168  ;;  %s170_s4 = scalar_lea.sflag [#allocation6], %s661_s23  ;;  %s173_s26 = scalar_lea.vmem [#allocation5], %s664_s25 }
  0x38   : > { %509 = dma.done.wait (%p590_p6), %s170_s4, 128  }
  0x39   : > { %511 = vsyncadd (%p590_p6), %s170_s4, 4294967168  ;;  %v200_v0 = vld [vmem:[%s163_s28] sm:$0xff]  ;;  %v201_v7 = vld [vmem:[%s173_s26] sm:$0xff]  ;;  %s342_s30 = sshll.u32 %s568_s13, 3  ;;  %s199_s8 = scalar_lea.vmem [#allocation7], %s664_s25 }
  0x3a   : > { %v205_v1 = vand.u32 2147483647, %v200_v0  ;;  %v202_v9 = vmax.f32 %v200_v0, 0.0  ;;  %v203_v10 = vmul.f32 %v201_v7, %v200_v0  ;;  %s232_s7 = scalar_lea.hbm %s714_s2, %s342_s30  ;;  %s234_s14 = sshll.u32 %s199_s8, 4  ;;  %s235_s14 = int_to_ptr.vmem [resolvable:$true] %s234_s14 }
  0x3b   : > { %s236_s16 = sshll.u32 %s232_s7, 4  ;;  %s222_s13 = scalar_lea.sflag [#allocation4], %s661_s23  ;;  %s237_s16 = int_to_ptr.hbm [resolvable:$true] %s236_s16 }
  0x3c   : > { %v206_v2 = vsub.f32 0.0, %v205_v1  ;;  %v204_v14 = vsub.f32 %v202_v9, %v203_v10  ;;  %s474_s17 = sshra.s32 %s237_s16, 4  ;;  %s480_s19 = scalar_lea.hbm %s714_s2, 16  ;;  %s475_s17 = int_to_ptr.hbm [resolvable:$true] %s474_s17 }
  0x3d   : > { %s476_s29 = scalar_lea.hbm %s475_s17, 8  ;;  %p481_p10 = scmp.lt.s32.totalorder %s475_s17, %s714_s2 }
  0x3e   : > { %v207_v3 = vmul.f32 1.442695, %v206_v2  ;;  %p477_p6 = scmp.ne.s32.totalorder %s475_s17, %s476_s29  ;;  %p482_p2 = scmp.lt.s32.totalorder %s480_s19, %s476_s29 }
  0x40   : > { %396 = vpow2.f32 %v207_v3  ;;  %p478_p13 = pnand %p477_p6, %p597_p11  ;;  %p483_p9 = por %p482_p2, %p481_p10 }
  0x42   : > { %p479_p3 = pneg %p478_p13 }
  0x44   : > { %p484_p0 = pnand %p483_p9, %p479_p3 }
  0x46   : > { %v397_v4 = vpop.eup %396 }
  0x47   : > { %v209_v5 = vadd.f32 1.0, %v397_v4  ;;  %v212_v6 = vmul.f32 -0.5, %v397_v4  ;;  %v215_v11 = vand.u32 2147483647, %v397_v4 }
  0x49   : > { %398 = vlog2.f32 %v209_v5  ;;  %v213_v8 = vadd.f32 1.0, %v212_v6  ;;  %vm216_vm0 = vcmp.lt.f32.partialorder %v215_v11, 0.0004427343 }
  0x4b   : > { %v214_v12 = vmul.f32 %v397_v4, %v213_v8 }
  0x4f   : > { %v399_v13 = vpop.eup %398 }
  0x50   : > { %v211_v15 = vmul.f32 0.6931472, %v399_v13 }
  0x52   : > { %v217_v16 = vsel %vm216_vm0, %v214_v12, %v211_v15 }
  0x53   : > { %v218_v17 = vadd.f32 %v217_v16, %v204_v14 }
  0x55   : > { %v219_v18 = vsub.f32 0.0, %v218_v17 }
  0x57   : > { %220 = vst [vmem:[%s199_s8] sm:$0xff] %v219_v18 }
  0x58   : > { %487 = shalt.err (!%p484_p0)
}
  0x59   : > { %349 = dma.vmem_to_hbm [thread:$0]  (%p597_p11), %s235_s14, 128, %s237_s16, %s222_s13  }
  0x5a PF: > { %s248_s23 = sand.u32 1, %s518_s9   ;;  %p721_p1 = scmp.ge.s32.totalorder %s530_s12, 2 }
  0x5b   : > { %s249_s27 = scalar_lea.sflag [#allocation4], %s248_s23 }
  0x5c   : > { %p359_p4 = pnand %p721_p1, %p601_p12 }
  0x5e   : > { %p360_p7 = pneg %p359_p4 }
  0x60   : > { %513 = dma.done.wait (%p360_p7), %s249_s27, 128  }
  0x61   : > { %515 = vsyncadd (%p360_p7), %s249_s27, 4294967168  ;;  %p18_p5 = scmp.ge.s32.totalorder %s572_s15, 4   ;;  %s722_s9 = smov %s522_s10 }
  0x62   : > { %s723_s10 = smov %s526_s11  ;;  %s724_s11 = smov %s584_s18 }
  0x63   : > { %s725_s12 = smov %s572_s15  ;;  %20 = sbr.rel (!%p18_p5) target bundleno = 7 (0x7), region = 86 }
  0x68   :  { %255 = vsyncpa [#allocation3], 1 }
  0x69   :  { %257 = vsyncpa [#allocation3 + $0x1], 1 }
  0x6a   :  { %258 = vsyncpa [#allocation6], 1 }
  0x6b   :  { %260 = vsyncpa [#allocation6 + $0x1], 1 }
  0x6c   :  { %261 = vsyncpa [#allocation4], 1 }
  0x6d   :  { %263 = vsyncpa [#allocation4 + $0x1], 1 }

</bundles_post_ra>
